<compile_context>
chip_gen: v7x
topology: tpu7x:2x2x1
jax: 0.10.0
libtpu: 0.0.40
codegen_flags: <defaults>
</compile_context>

<pallas_src>
import jax
import jax.numpy as jnp
from jax.experimental import pallas as pl
from jax.experimental.pallas import tpu as pltpu

_LANE = 128
_SUBLANE = 8
_PAD_LOGIT = -100.0  # sigmoid(-100) == 0 and log1p(exp(-100)) == 0 in float32


def _round_up(x, m):
    return (x + m - 1) // m * m


def _hw_params():
    """(vmem_capacity_bytes, num_tensorcores) with conservative fallbacks."""
    vmem_cap = 64 * 1024 * 1024          # v7x per-TC VMEM: safe lower bound
    num_cores = 1
    try:
        info = pltpu.get_tpu_info()
        cap = getattr(info, "vmem_capacity_bytes", None)
        if isinstance(cap, int) and cap > 0:
            vmem_cap = cap
        for name in ("num_tensorcores", "num_cores", "core_count"):
            n = getattr(info, name, None)
            if isinstance(n, int) and n > 0:
                num_cores = n
                break
    except Exception:
        pass
    if num_cores == 1:
        try:
            n = getattr(jax.devices()[0], "num_cores", None)
            if isinstance(n, int) and n > 0:
                num_cores = n
        except Exception:
            pass
    return vmem_cap, num_cores


def _calc_loss_partials_kernel(pred_ref, target_ref,
                               bce_ref, inter_ref, psum_ref, tsum_ref):
    """Streams (NC, tile_k) chunks and accumulates per-row partial sums."""
    k = pl.program_id(1)

    @pl.when(k == 0)
    def _init():
        bce_ref[...] = jnp.zeros_like(bce_ref)
        inter_ref[...] = jnp.zeros_like(inter_ref)
        psum_ref[...] = jnp.zeros_like(psum_ref)
        tsum_ref[...] = jnp.zeros_like(tsum_ref)

    x = pred_ref[...].astype(jnp.float32)    # logits   (NC, TK)
    t = target_ref[...].astype(jnp.float32)  # targets  (NC, TK)

    # Numerically stable BCE-with-logits and sigmoid sharing ONE exp/element.
    e = jnp.exp(-jnp.abs(x))                               # exp(-|x|) in (0, 1]
    bce_elem = jnp.maximum(x, 0.0) - x * t + jnp.log1p(e)
    inv = 1.0 / (1.0 + e)                                  # exact divide (accuracy)
    sig = jnp.where(x >= 0, inv, e * inv)                  # sigmoid(x), no 2nd exp

    # Per-row (lane axis) reductions, accumulated into resident output blocks.
    bce_ref[0] = bce_ref[0] + jnp.sum(bce_elem, axis=1, keepdims=True)
    inter_ref[0] = inter_ref[0] + jnp.sum(sig * t, axis=1, keepdims=True)
    psum_ref[0] = psum_ref[0] + jnp.sum(sig, axis=1, keepdims=True)
    tsum_ref[0] = tsum_ref[0] + jnp.sum(t, axis=1, keepdims=True)


def calc_loss(pred, target, bce_weight=0.5, smooth=1.0, tile_k=None):
    """pred, target: (N, C, H, W). Returns scalar float32 loss."""
    N, C, H, W = pred.shape
    NC = N * C
    HW = H * W
    pred2d = pred.reshape(NC, HW)
    target2d = target.reshape(NC, HW)

    itemsize = jnp.dtype(pred2d.dtype).itemsize
    hw_up = _round_up(HW, _LANE)
    nc_pad = _round_up(NC, _SUBLANE)          # VMEM sublane footprint per column

    vmem_cap, num_cores = _hw_params()
    # Scoped VMEM limit: ~60% of physical, clamped. 128 MiB parts (v5e/v6e)
    # -> ~76 MiB; v7x's 64 MiB -> ~38 MiB.
    vmem_limit = max(32 * 1024 * 1024, min(int(vmem_cap * 0.6), 80 * 1024 * 1024))

    if tile_k is None:
        # 2 inputs x 2 pipeline buffers must fit the scoped limit with headroom
        # for outputs / compiler scratch; account for sublane padding.
        per_buffer = int(vmem_limit * 0.85) // 4
        tile_k = per_buffer // (nc_pad * itemsize)
        tile_k = max(_LANE, (tile_k // _LANE) * _LANE)
        tile_k = min(tile_k, hw_up)
    else:
        tile_k = min(max(_LANE, _round_up(tile_k, _LANE)), hw_up)

    num_chunks = -(-HW // tile_k)
    # Only split the parallel axis when there is more than one TensorCore.
    P = 2 if (num_cores >= 2 and num_chunks >= 2) else 1
    KT = -(-num_chunks // P)                  # streaming chunks per parallel slice
    HW_pad = P * KT * tile_k

    if HW_pad != HW:
        pad = ((0, 0), (0, HW_pad - HW))
        # Pad logits with a large negative constant and targets with zero so
        # padded elements contribute exactly 0 to every partial sum -> no
        # in-kernel masking needed.
        pred2d = jnp.pad(pred2d, pad, constant_values=_PAD_LOGIT)
        target2d = jnp.pad(target2d, pad, constant_values=0.0)

    part_shape = jax.ShapeDtypeStruct((P, NC, 1), jnp.float32)
    part_spec = pl.BlockSpec((1, NC, 1), lambda p, k: (p, 0, 0))
    in_spec = pl.BlockSpec((NC, tile_k), lambda p, k: (0, p * KT + k))

    cost = pl.CostEstimate(
        flops=10 * NC * HW,
        transcendentals=3 * NC * HW,
        bytes_accessed=2 * NC * HW_pad * itemsize + 4 * P * NC * 4,
    )

    bce_p, inter_p, psum_p, tsum_p = pl.pallas_call(
        _calc_loss_partials_kernel,
        out_shape=(part_shape, part_shape, part_shape, part_shape),
        grid=(P, KT),
        in_specs=[in_spec, in_spec],
        out_specs=(part_spec, part_spec, part_spec, part_spec),
        compiler_params=pltpu.CompilerParams(
            dimension_semantics=("parallel", "arbitrary"),
            vmem_limit_bytes=vmem_limit,
        ),
        cost_estimate=cost,
    )(pred2d, target2d)

    # Tiny final combine in plain JAX (P*NC scalars per quantity).
    bce = jnp.sum(bce_p) / float(NC * HW)
    inter = jnp.sum(inter_p, axis=0)          # (NC, 1)
    psum = jnp.sum(psum_p, axis=0)
    tsum = jnp.sum(tsum_p, axis=0)
    dice = jnp.mean(1.0 - (2.0 * inter + smooth) / (psum + tsum + smooth))
    return bce * bce_weight + dice * (1.0 - bce_weight)


def _reference_loss(pred, target, bce_weight=0.5, smooth=1.0):
    # Pure-JAX reference mirroring the PyTorch module.
    x = pred.astype(jnp.float32)
    t = target.astype(jnp.float32)
    bce = jnp.mean(jnp.maximum(x, 0.0) - x * t + jnp.log1p(jnp.exp(-jnp.abs(x))))
    sig = jax.nn.sigmoid(x)
    inter = (sig * t).sum(axis=(2, 3))
    dice = 1.0 - (2.0 * inter + smooth) / (sig.sum(axis=(2, 3)) + t.sum(axis=(2, 3)) + smooth)
    dice = dice.mean()
    return bce * bce_weight + dice * (1.0 - bce_weight)


if __name__ == "__main__":
    key = jax.random.PRNGKey(0)
    cases = [
        ((2, 4, 16, 16), None),   # single chunk, no padding
        ((2, 3, 20, 12), None),   # H*W = 240 -> padded to 256 (pad-with--100 path)
        ((2, 4, 32, 32), 256),    # forced 4 chunks -> streaming accumulation path
    ]
    for idx, (shape, tk) in enumerate(cases):
        k1, k2 = jax.random.split(jax.random.fold_in(key, idx))
        pred = jax.random.normal(k1, shape, dtype=jnp.float32)        # logits
        target = (jax.random.uniform(k2, shape) > 0.5).astype(jnp.float32)

        loss = jax.block_until_ready(calc_loss(pred, target, tile_k=tk))
        ref = _reference_loss(pred, target)
        assert jnp.allclose(loss, ref, atol=1e-5, rtol=1e-5), (shape, loss, ref)

    print("KERNEL_OK")
</pallas_src>

<mosaic_0001>
module attributes {stable_mosaic.version = 11 : i64} {
  func.func @_calc_loss_partials_kernel(%arg0: i32, %arg1: i32, %arg2: memref<8x256xf32, #tpu.memory_space<vmem>>, %arg3: memref<8x256xf32, #tpu.memory_space<vmem>>, %arg4: memref<1x8x1xf32, #tpu.memory_space<vmem>>, %arg5: memref<1x8x1xf32, #tpu.memory_space<vmem>>, %arg6: memref<1x8x1xf32, #tpu.memory_space<vmem>>, %arg7: memref<1x8x1xf32, #tpu.memory_space<vmem>>) attributes {dimension_semantics = [#tpu.dimension_semantics<parallel>, #tpu.dimension_semantics<arbitrary>], iteration_bounds = array<i64: 1, 1>, scalar_prefetch = 0 : i64, scratch_operands = 0 : i64, tpu.core_type = #tpu.core_type<tc>, window_params = [{transform_indices = @transform_0, window_bounds = array<i64: 8, 256>}, {transform_indices = @transform_1, window_bounds = array<i64: 8, 256>}, {transform_indices = @transform_2, window_bounds = array<i64: 1, 8, 1>}, {transform_indices = @transform_3, window_bounds = array<i64: 1, 8, 1>}, {transform_indices = @transform_4, window_bounds = array<i64: 1, 8, 1>}, {transform_indices = @transform_5, window_bounds = array<i64: 1, 8, 1>}]} {
    %c0_i32 = arith.constant 0 : i32
    %0 = arith.cmpi eq, %arg1, %c0_i32 : i32
    %1 = arith.extui %0 : i1 to i32
    %c0_i32_0 = arith.constant 0 : i32
    %2 = arith.cmpi ne, %1, %c0_i32_0 : i32
    scf.if %2 {
      %cst_36 = arith.constant 0.000000e+00 : f32
      %56 = vector.broadcast %cst_36 : f32 to vector<1x8x1xf32>
      %c0_37 = arith.constant 0 : index
      %c0_38 = arith.constant 0 : index
      %c0_39 = arith.constant 0 : index
      %57 = vector.load %arg4[%c0_37, %c0_38, %c0_39] : memref<1x8x1xf32, #tpu.memory_space<vmem>>, vector<1x8x1xf32>
      tpu.vector_store %arg4[%c0_37, %c0_38, %c0_39], %56 {strides = array<i32>} : memref<1x8x1xf32, #tpu.memory_space<vmem>>, vector<1x8x1xf32>,
      %cst_40 = arith.constant 0.000000e+00 : f32
      %58 = vector.broadcast %cst_40 : f32 to vector<1x8x1xf32>
      %c0_41 = arith.constant 0 : index
      %c0_42 = arith.constant 0 : index
      %c0_43 = arith.constant 0 : index
      %59 = vector.load %arg5[%c0_41, %c0_42, %c0_43] : memref<1x8x1xf32, #tpu.memory_space<vmem>>, vector<1x8x1xf32>
      tpu.vector_store %arg5[%c0_41, %c0_42, %c0_43], %58 {strides = array<i32>} : memref<1x8x1xf32, #tpu.memory_space<vmem>>, vector<1x8x1xf32>,
      %cst_44 = arith.constant 0.000000e+00 : f32
      %60 = vector.broadcast %cst_44 : f32 to vector<1x8x1xf32>
      %c0_45 = arith.constant 0 : index
      %c0_46 = arith.constant 0 : index
      %c0_47 = arith.constant 0 : index
      %61 = vector.load %arg6[%c0_45, %c0_46, %c0_47] : memref<1x8x1xf32, #tpu.memory_space<vmem>>, vector<1x8x1xf32>
      tpu.vector_store %arg6[%c0_45, %c0_46, %c0_47], %60 {strides = array<i32>} : memref<1x8x1xf32, #tpu.memory_space<vmem>>, vector<1x8x1xf32>,
      %cst_48 = arith.constant 0.000000e+00 : f32
      %62 = vector.broadcast %cst_48 : f32 to vector<1x8x1xf32>
      %c0_49 = arith.constant 0 : index
      %c0_50 = arith.constant 0 : index
      %c0_51 = arith.constant 0 : index
      %63 = vector.load %arg7[%c0_49, %c0_50, %c0_51] : memref<1x8x1xf32, #tpu.memory_space<vmem>>, vector<1x8x1xf32>
      tpu.vector_store %arg7[%c0_49, %c0_50, %c0_51], %62 {strides = array<i32>} : memref<1x8x1xf32, #tpu.memory_space<vmem>>, vector<1x8x1xf32>,
    } else {
    }
    %c0 = arith.constant 0 : index
    %c0_1 = arith.constant 0 : index
    %3 = vector.load %arg2[%c0, %c0_1] : memref<8x256xf32, #tpu.memory_space<vmem>>, vector<8x256xf32>
    %c0_2 = arith.constant 0 : index
    %c0_3 = arith.constant 0 : index
    %4 = vector.load %arg3[%c0_2, %c0_3] : memref<8x256xf32, #tpu.memory_space<vmem>>, vector<8x256xf32>
    %5 = math.absf %3 : vector<8x256xf32>
    %cst = arith.constant 0.000000e+00 : f32
    %6 = vector.broadcast %cst : f32 to vector<8x256xf32>
    %7 = arith.subf %6, %5 : vector<8x256xf32>
    %8 = math.exp %7 : vector<8x256xf32>
    %cst_4 = arith.constant 0.000000e+00 : f32
    %9 = vector.broadcast %cst_4 : f32 to vector<8x256xf32>
    %10 = arith.maximumf %3, %9 : vector<8x256xf32>
    %11 = arith.mulf %3, %4 : vector<8x256xf32>
    %12 = arith.subf %10, %11 : vector<8x256xf32>
    %13 = math.log1p %8 : vector<8x256xf32>
    %14 = arith.addf %12, %13 : vector<8x256xf32>
    %cst_5 = arith.constant 1.000000e+00 : f32
    %15 = vector.broadcast %cst_5 : f32 to vector<8x256xf32>
    %16 = arith.addf %15, %8 : vector<8x256xf32>
    %cst_6 = arith.constant 1.000000e+00 : f32
    %17 = vector.broadcast %cst_6 : f32 to vector<8x256xf32>
    %18 = arith.divf %17, %16 : vector<8x256xf32>
    %cst_7 = arith.constant 0.000000e+00 : f32
    %19 = vector.broadcast %cst_7 : f32 to vector<8x256xf32>
    %20 = arith.cmpf oge, %3, %19 : vector<8x256xf32>
    %21 = arith.mulf %8, %18 : vector<8x256xf32>
    %22 = arith.select %20, %18, %21 : vector<8x256xi1>, vector<8x256xf32>
    %c0_8 = arith.constant 0 : index
    %c0_9 = arith.constant 0 : index
    %c0_10 = arith.constant 0 : index
    %23 = vector.load %arg4[%c0_8, %c0_9, %c0_10] : memref<1x8x1xf32, #tpu.memory_space<vmem>>, vector<1x8x1xf32>
    %24 = vector.shape_cast %23 : vector<1x8x1xf32> to vector<8x1xf32>
    %cst_11 = arith.constant dense<0.000000e+00> : vector<8xf32>
    %25 = vector.multi_reduction <add>, %14, %cst_11 [1] : vector<8x256xf32> to vector<8xf32>
    %26 = vector.shape_cast %25 : vector<8xf32> to vector<8x1xf32>
    %27 = arith.addf %24, %26 : vector<8x1xf32>
    %c0_12 = arith.constant 0 : index
    %c0_13 = arith.constant 0 : index
    %c0_14 = arith.constant 0 : index
    %28 = vector.load %arg4[%c0_12, %c0_13, %c0_14] : memref<1x8x1xf32, #tpu.memory_space<vmem>>, vector<1x8x1xf32>
    %29 = vector.shape_cast %28 : vector<1x8x1xf32> to vector<8x1xf32>
    %30 = vector.shape_cast %27 : vector<8x1xf32> to vector<1x8x1xf32>
    tpu.vector_store %arg4[%c0_12, %c0_13, %c0_14], %30 {strides = array<i32>} : memref<1x8x1xf32, #tpu.memory_space<vmem>>, vector<1x8x1xf32>,
    %c0_15 = arith.constant 0 : index
    %c0_16 = arith.constant 0 : index
    %c0_17 = arith.constant 0 : index
    %31 = vector.load %arg5[%c0_15, %c0_16, %c0_17] : memref<1x8x1xf32, #tpu.memory_space<vmem>>, vector<1x8x1xf32>
    %32 = vector.shape_cast %31 : vector<1x8x1xf32> to vector<8x1xf32>
    %33 = arith.mulf %22, %4 : vector<8x256xf32>
    %cst_18 = arith.constant dense<0.000000e+00> : vector<8xf32>
    %34 = vector.multi_reduction <add>, %33, %cst_18 [1] : vector<8x256xf32> to vector<8xf32>
    %35 = vector.shape_cast %34 : vector<8xf32> to vector<8x1xf32>
    %36 = arith.addf %32, %35 : vector<8x1xf32>
    %c0_19 = arith.constant 0 : index
    %c0_20 = arith.constant 0 : index
    %c0_21 = arith.constant 0 : index
    %37 = vector.load %arg5[%c0_19, %c0_20, %c0_21] : memref<1x8x1xf32, #tpu.memory_space<vmem>>, vector<1x8x1xf32>
    %38 = vector.shape_cast %37 : vector<1x8x1xf32> to vector<8x1xf32>
    %39 = vector.shape_cast %36 : vector<8x1xf32> to vector<1x8x1xf32>
    tpu.vector_store %arg5[%c0_19, %c0_20, %c0_21], %39 {strides = array<i32>} : memref<1x8x1xf32, #tpu.memory_space<vmem>>, vector<1x8x1xf32>,
    %c0_22 = arith.constant 0 : index
    %c0_23 = arith.constant 0 : index
    %c0_24 = arith.constant 0 : index
    %40 = vector.load %arg6[%c0_22, %c0_23, %c0_24] : memref<1x8x1xf32, #tpu.memory_space<vmem>>, vector<1x8x1xf32>
    %41 = vector.shape_cast %40 : vector<1x8x1xf32> to vector<8x1xf32>
    %cst_25 = arith.constant dense<0.000000e+00> : vector<8xf32>
    %42 = vector.multi_reduction <add>, %22, %cst_25 [1] : vector<8x256xf32> to vector<8xf32>
    %43 = vector.shape_cast %42 : vector<8xf32> to vector<8x1xf32>
    %44 = arith.addf %41, %43 : vector<8x1xf32>
    %c0_26 = arith.constant 0 : index
    %c0_27 = arith.constant 0 : index
    %c0_28 = arith.constant 0 : index
    %45 = vector.load %arg6[%c0_26, %c0_27, %c0_28] : memref<1x8x1xf32, #tpu.memory_space<vmem>>, vector<1x8x1xf32>
    %46 = vector.shape_cast %45 : vector<1x8x1xf32> to vector<8x1xf32>
    %47 = vector.shape_cast %44 : vector<8x1xf32> to vector<1x8x1xf32>
    tpu.vector_store %arg6[%c0_26, %c0_27, %c0_28], %47 {strides = array<i32>} : memref<1x8x1xf32, #tpu.memory_space<vmem>>, vector<1x8x1xf32>,
    %c0_29 = arith.constant 0 : index
    %c0_30 = arith.constant 0 : index
    %c0_31 = arith.constant 0 : index
    %48 = vector.load %arg7[%c0_29, %c0_30, %c0_31] : memref<1x8x1xf32, #tpu.memory_space<vmem>>, vector<1x8x1xf32>
    %49 = vector.shape_cast %48 : vector<1x8x1xf32> to vector<8x1xf32>
    %cst_32 = arith.constant dense<0.000000e+00> : vector<8xf32>
    %50 = vector.multi_reduction <add>, %4, %cst_32 [1] : vector<8x256xf32> to vector<8xf32>
    %51 = vector.shape_cast %50 : vector<8xf32> to vector<8x1xf32>
    %52 = arith.addf %49, %51 : vector<8x1xf32>
    %c0_33 = arith.constant 0 : index
    %c0_34 = arith.constant 0 : index
    %c0_35 = arith.constant 0 : index
    %53 = vector.load %arg7[%c0_33, %c0_34, %c0_35] : memref<1x8x1xf32, #tpu.memory_space<vmem>>, vector<1x8x1xf32>
    %54 = vector.shape_cast %53 : vector<1x8x1xf32> to vector<8x1xf32>
    %55 = vector.shape_cast %52 : vector<8x1xf32> to vector<1x8x1xf32>
    tpu.vector_store %arg7[%c0_33, %c0_34, %c0_35], %55 {strides = array<i32>} : memref<1x8x1xf32, #tpu.memory_space<vmem>>, vector<1x8x1xf32>,
    return
  }
  func.func @transform_0(%arg0: i32, %arg1: i32) -> (i32, i32) {
    %c1_i32 = arith.constant 1 : i32
    %0 = arith.muli %arg0, %c1_i32 : i32
    %1 = arith.addi %0, %arg1 : i32
    %c0_i32 = arith.constant 0 : i32
    %c0_i32_0 = arith.constant 0 : i32
    return %c0_i32, %1 : i32, i32
  }
  func.func @transform_1(%arg0: i32, %arg1: i32) -> (i32, i32) {
    %c1_i32 = arith.constant 1 : i32
    %0 = arith.muli %arg0, %c1_i32 : i32
    %1 = arith.addi %0, %arg1 : i32
    %c0_i32 = arith.constant 0 : i32
    %c0_i32_0 = arith.constant 0 : i32
    return %c0_i32, %1 : i32, i32
  }
  func.func @transform_2(%arg0: i32, %arg1: i32) -> (i32, i32, i32) {
    %c0_i32 = arith.constant 0 : i32
    %c0_i32_0 = arith.constant 0 : i32
    %c0_i32_1 = arith.constant 0 : i32
    return %arg0, %c0_i32, %c0_i32_0 : i32, i32, i32
  }
  func.func @transform_3(%arg0: i32, %arg1: i32) -> (i32, i32, i32) {
    %c0_i32 = arith.constant 0 : i32
    %c0_i32_0 = arith.constant 0 : i32
    %c0_i32_1 = arith.constant 0 : i32
    return %arg0, %c0_i32, %c0_i32_0 : i32, i32, i32
  }
  func.func @transform_4(%arg0: i32, %arg1: i32) -> (i32, i32, i32) {
    %c0_i32 = arith.constant 0 : i32
    %c0_i32_0 = arith.constant 0 : i32
    %c0_i32_1 = arith.constant 0 : i32
    return %arg0, %c0_i32, %c0_i32_0 : i32, i32, i32
  }
  func.func @transform_5(%arg0: i32, %arg1: i32) -> (i32, i32, i32) {
    %c0_i32 = arith.constant 0 : i32
    %c0_i32_0 = arith.constant 0 : i32
    %c0_i32_1 = arith.constant 0 : i32
    return %arg0, %c0_i32, %c0_i32_0 : i32, i32, i32
  }
}

</mosaic_0001>

<bundles_post_ra>
// kernel: tpu_custom_call.1
= control target key start
LH: loop header
LB: loop body
LE: loop exit
PB: predicated region body
PF: predicated region fallthrough
CT: control target
= control target key end

     0   :  { %11 = vsyncpa [#allocation3], 0  ;;  %s319_s0 = inlined_call_operand.hbm [shape: f32[8,256], index: 0, kind: input, shape index: {}]   ;;  %s320_s1 = inlined_call_operand.hbm [shape: f32[8,256], index: 1, kind: input, shape index: {}]   ;;  %s321_s2 = inlined_call_operand.vmem [shape: f32[1,8,1], index: 2, kind: output, shape index: {0}]   ;;  %s322_s3 = inlined_call_operand.vmem [shape: f32[1,8,1], index: 3, kind: output, shape index: {1}]   ;;  %s323_s4 = inlined_call_operand.vmem [shape: f32[1,8,1], index: 4, kind: output, shape index: {2}]   ;;  %s324_s5 = inlined_call_operand.vmem [shape: f32[1,8,1], index: 5, kind: output, shape index: {3}]  }
   0x1   :  { %12 = vsyncpa [#allocation5], 0  ;;  %s218_s18 = smov [#allocation2]   ;;  %s219_s20 = smov [#allocation4]  }
   0x2   :  { %s23_s19 = sshll.u32 %s218_s18, 4  ;;  %s37_s21 = sshll.u32 %s219_s20, 4  ;;  %s24_s19 = int_to_ptr.vmem [resolvable:$true] %s23_s19  ;;  %s38_s21 = int_to_ptr.vmem [resolvable:$true] %s37_s21 }
   0x3   :  { %s170_s24 = scalar_lea.hbm %s319_s0, 256 }
   0x4   :  { %p171_p0 = scmp.ne.s32.totalorder %s319_s0, %s170_s24  ;;  %p174_p1 = scmp.lt.u32.totalorder %s170_s24, %s319_s0 }
   0x6   :  { %p176_p2 = pnand %p174_p1, %p171_p0 }
   0x8   :  { %179 = shalt.err (!%p176_p2)
}
   0x9   :  { %s180_s29 = scalar_lea.vmem %s24_s19, 256  ;;  %p185_p4 = scmp.lt.s32.totalorder %s24_s19, %s24_s19 }
   0xa   :  { %p181_p3 = scmp.ne.s32.totalorder %s24_s19, %s180_s29  ;;  %p186_p5 = scmp.lt.s32.totalorder %s180_s29, %s180_s29 }
   0xc   :  { %p187_p6 = por %p186_p5, %p185_p4 }
   0xe   :  { %p188_p7 = pnand %p187_p6, %p181_p3 }
  0x10   :  { %191 = shalt.err (!%p188_p7)
}
  0x11   :  { %26 = dma.hbm_to_vmem [thread:$0]  %s319_s0, 256, %s24_s19, [#allocation3]  }
  0x12   :  { %s192_s9 = scalar_lea.hbm %s320_s1, 256 }
  0x13   :  { %p193_p8 = scmp.ne.s32.totalorder %s320_s1, %s192_s9  ;;  %p196_p9 = scmp.lt.u32.totalorder %s192_s9, %s320_s1 }
  0x15   :  { %p198_p10 = pnand %p196_p9, %p193_p8 }
  0x17   :  { %201 = shalt.err (!%p198_p10)
}
  0x18   :  { %s202_s14 = scalar_lea.vmem %s38_s21, 256  ;;  %p207_p12 = scmp.lt.s32.totalorder %s38_s21, %s38_s21 }
  0x19   :  { %p203_p11 = scmp.ne.s32.totalorder %s38_s21, %s202_s14  ;;  %p208_p13 = scmp.lt.s32.totalorder %s202_s14, %s202_s14 }
  0x1b   :  { %p209_p0 = por %p208_p13, %p207_p12 }
  0x1d   :  { %p210_p1 = pnand %p209_p0, %p203_p11 }
  0x1f   :  { %213 = shalt.err (!%p210_p1)
}
  0x20   :  { %40 = dma.hbm_to_vmem [thread:$0]  %s320_s1, 256, %s38_s21, [#allocation5]  }
  0x21   :  { %214 = dma.done.wait [#allocation3], 256  }
  0x22   :  { %215 = vsyncadd [#allocation3], 4294967040 }
  0x23   :  { %216 = dma.done.wait [#allocation5], 256  }
  0x24   :  { %217 = vsyncadd [#allocation5], 4294967040  ;;  %vm55_vm0 = vcmask 7168   ;;  %v220_v0 = vmov 0.0   ;;  %v60_v1 = vld [vmem:[#allocation2] sm:$0xff]  ;;  %v61_v2 = vld [vmem:[#allocation2 + $0x8] sm:$0xff] }
  0x25   :  { %58 = vst.msk [vmem:[%s323_s4] sm:$0xff] %vm55_vm0, %v220_v0  ;;  %56 = vst.msk [vmem:[%s321_s2] sm:$0xff] %vm55_vm0, %v220_v0  ;;  %v64_v3 = vand.u32 2147483647, %v60_v1  ;;  %v65_v4 = vand.u32 2147483647, %v61_v2 }
  0x26   :  { %57 = vst.msk [vmem:[%s322_s3] sm:$0xff] %vm55_vm0, %v220_v0  ;;  %59 = vst.msk [vmem:[%s324_s5] sm:$0xff] %vm55_vm0, %v220_v0  ;;  %v62_v15 = vld [vmem:[#allocation4] sm:$0xff]  ;;  %v63_v16 = vld [vmem:[#allocation4 + $0x8] sm:$0xff]  ;;  %v72_v18 = vmax.f32 %v60_v1, 0.0  ;;  %v73_v22 = vmax.f32 %v61_v2, 0.0 }
  0x27   :  { %v66_v5 = vsub.f32 0.0, %v64_v3  ;;  %v67_v6 = vsub.f32 0.0, %v65_v4  ;;  %v74_v19 = vmul.f32 %v62_v15, %v60_v1  ;;  %v75_v23 = vmul.f32 %v63_v16, %v61_v2 }
  0x28   :  { %vm104_vm1 = vcmp.ge.f32.partialorder %v60_v1, 0.0  ;;  %vm105_vm2 = vcmp.ge.f32.partialorder %v61_v2, 0.0  ;;  %v132_v46 = vadd.f32 %v63_v16, %v62_v15 }
  0x29   :  { %v68_v7 = vmul.f32 1.442695, %v66_v5  ;;  %v70_v8 = vmul.f32 1.442695, %v67_v6  ;;  %v76_v31 = vsub.f32 %v72_v18, %v74_v19  ;;  %v77_v35 = vsub.f32 %v73_v22, %v75_v23 }
  0x2b   :  { %158 = vpow2.f32 %v68_v7 }
  0x2c   :  { %160 = vpow2.f32 %v70_v8  ;;  %v125_v49 = vld [vmem:[%s323_s4] sm:$0xff] }
  0x2d   :  { %v110_v52 = vld [vmem:[%s321_s2] sm:$0xff] }
  0x2e   :  { %v131_v53 = vld [vmem:[%s324_s5] sm:$0xff] }
  0x2f   :  { %v117_v58 = vld [vmem:[%s322_s3] sm:$0xff] }
  0x35   :  { %v159_v9 = vpop.eup %158 }
  0x36   :  { %v161_v10 = vpop.eup %160  ;;  %v78_v11 = vadd.f32 1.0, %v159_v9  ;;  %v81_v13 = vmul.f32 -0.5, %v159_v9  ;;  %v84_v20 = vand.u32 2147483647, %v159_v9 }
  0x37   :  { %v87_v12 = vadd.f32 1.0, %v161_v10  ;;  %v90_v14 = vmul.f32 -0.5, %v161_v10  ;;  %v93_v24 = vand.u32 2147483647, %v161_v10 }
  0x38   :  { %162 = vrcp.f32 %v78_v11  ;;  %v82_v17 = vadd.f32 1.0, %v81_v13  ;;  %vm85_vm3 = vcmp.lt.f32.partialorder %v84_v20, 0.0004427343 }
  0x39   :  { %164 = vrcp.f32 %v87_v12  ;;  %v91_v21 = vadd.f32 1.0, %v90_v14  ;;  %vm94_vm4 = vcmp.lt.f32.partialorder %v93_v24, 0.0004427343 }
  0x3a   :  { %166 = vlog2.f32 %v78_v11  ;;  %v83_v28 = vmul.f32 %v159_v9, %v82_v17 }
  0x3b   :  { %168 = vlog2.f32 %v87_v12  ;;  %v92_v32 = vmul.f32 %v161_v10, %v91_v21 }
  0x42   :  { %v163_v25 = vpop.eup %162 }
  0x43   :  { %v165_v26 = vpop.eup %164  ;;  %v106_v27 = vmul.f32 %v163_v25, %v159_v9 }
  0x44   :  { %v167_v29 = vpop.eup %166  ;;  %v107_v30 = vmul.f32 %v165_v26, %v161_v10 }
  0x45   :  { %v169_v33 = vpop.eup %168  ;;  %v108_v34 = vsel %vm104_vm1, %v163_v25, %v106_v27  ;;  %v80_v36 = vmul.f32 0.6931472, %v167_v29 }
  0x46   :  { %v109_v37 = vsel %vm105_vm2, %v165_v26, %v107_v30  ;;  %v89_v38 = vmul.f32 0.6931472, %v169_v33  ;;  %v118_v44 = vmul.f32 %v108_v34, %v62_v15 }
  0x47   :  { %v126_v39 = vadd.f32 %v109_v37, %v108_v34  ;;  %v86_v40 = vsel %vm85_vm3, %v83_v28, %v80_v36  ;;  %v119_v43 = vmul.f32 %v109_v37, %v63_v16 }
  0x48   :  { %v95_v41 = vsel %vm94_vm4, %v92_v32, %v89_v38  ;;  %v96_v42 = vadd.f32 %v86_v40, %v76_v31 }
  0x49   :  { %127 = vadd.xlane.f32.xlu1 %v126_v39  ;;  %v97_v45 = vadd.f32 %v95_v41, %v77_v35  ;;  %v120_v48 = vadd.f32 %v119_v43, %v118_v44 }
  0x4b   :  { %v111_v47 = vadd.f32 %v97_v45, %v96_v42 }
  0x4d   :  { %112 = vadd.xlane.f32.xlu0 %v111_v47  ;;  %133 = vadd.xlane.f32.xlu1 %v132_v46 }
  0x51   :  { %121 = vadd.xlane.f32.xlu0 %v120_v48 }
  0xd6   :  { %v128_v50 = vpop.xlane.xlu1 %127 }
  0xd7   :  { %v129_v51 = vadd.f32 %v128_v50, %v125_v49 }
  0xd9   :  { %130 = vst.msk [vmem:[%s323_s4] sm:$0xff] %vm55_vm0, %v129_v51 }
  0xda   :  { %v113_v54 = vpop.xlane.xlu0 %112  ;;  %v134_v55 = vpop.xlane.xlu1 %133 }
  0xdb   :  { %v114_v56 = vadd.f32 %v113_v54, %v110_v52  ;;  %v135_v57 = vadd.f32 %v134_v55, %v131_v53 }
  0xdd   :  { %116 = vst.msk [vmem:[%s321_s2] sm:$0xff] %vm55_vm0, %v114_v56  ;;  %136 = vst.msk [vmem:[%s324_s5] sm:$0xff] %vm55_vm0, %v135_v57 }
  0xde   :  { %v122_v59 = vpop.xlane.xlu0 %121 }
  0xdf   :  { %v123_v60 = vadd.f32 %v122_v59, %v117_v58 }
  0xe1   :  { %124 = vst.msk [vmem:[%s322_s3] sm:$0xff] %vm55_vm0, %v123_v60 }
  0xe2   :  { %153 = vsyncpa [#allocation3], 1 }
  0xe3   :  { %154 = vsyncpa [#allocation5], 1 }

</bundles_post_ra>
